<compile_context>
chip_gen: v7x
topology: tpu7x:2x2x1
jax: 0.10.0
libtpu: 0.0.40
codegen_flags: <defaults>
</compile_context>

<pallas_src>
import functools

import jax
import jax.numpy as jnp
from jax.experimental import pallas as pl
from jax.experimental.pallas import tpu as pltpu

BN_EPS = 1e-5
_VMEM_BUDGET = 24 * 1024 * 1024  # leave headroom under the 32 MiB scoped limit


def _round_up(x, m):
    return ((x + m - 1) // m) * m


def _pad2(a, rows, cols, dtype):
    out = jnp.zeros((rows, cols), dtype)
    return out.at[: a.shape[0], : a.shape[1]].set(a.astype(dtype))


def _pick_tile(dim_padded, cap):
    """Largest multiple of 128 <= cap that divides dim_padded (dim_padded % 128 == 0)."""
    t = min(cap, dim_padded)
    t = max(128, (t // 128) * 128)
    while dim_padded % t != 0:
        t -= 128
    return t


def _vmem_bytes(Bp, nin_p, tile_nh, tile_no):
    x_b = Bp * nin_p * 2                 # x block (index constant -> one buffer)
    w1_b = 2 * nin_p * tile_nh * 2       # double-buffered bf16 W1 tile
    w2_b = 2 * tile_nh * tile_no * 2     # double-buffered bf16 W2 tile
    gb_b = 2 * 2 * tile_nh * 4           # gamma / beta tiles
    out_b = 2 * Bp * tile_no * 4         # f32 output block
    acc_b = Bp * tile_no * 4             # f32 accumulator scratch
    return x_b + w1_b + w2_b + gb_b + out_b + acc_b


def _projection_kernel(x_ref, w1_ref, gamma_ref, beta_ref, w2_ref, o_ref, acc_ref,
                       *, inv_b):
    k = pl.program_id(1)

    @pl.when(k == 0)
    def _():
        acc_ref[...] = jnp.zeros_like(acc_ref)

    # lin1 (no bias): bf16 operands, f32 accumulation on the MXU.
    h = jnp.dot(x_ref[...], w1_ref[...], preferred_element_type=jnp.float32)

    # BatchNorm1d, training-mode batch statistics (biased variance), per feature.
    # Padded batch rows are exactly zero, so plain sums / true-B are exact; the
    # E[h^2] - E[h]^2 form keeps the padded rows out of the variance too.
    s1 = jnp.sum(h, axis=0, keepdims=True)
    s2 = jnp.sum(h * h, axis=0, keepdims=True)
    mean = s1 * inv_b
    var = jnp.maximum(s2 * inv_b - mean * mean, 0.0)

    # Fold BN affine into a single scale/shift (one mul + one add per element).
    scale = gamma_ref[...] * jax.lax.rsqrt(var + BN_EPS)   # rsqrt -> EUP slot
    shift = beta_ref[...] - mean * scale
    h_act = jnp.maximum(h * scale + shift, 0.0)            # BN + ReLU

    # lin2 (no bias): accumulate partial products over hidden tiles in f32.
    acc_ref[...] += jnp.dot(h_act.astype(w2_ref.dtype), w2_ref[...],
                            preferred_element_type=jnp.float32)

    @pl.when(k == pl.num_programs(1) - 1)
    def _():
        o_ref[...] = acc_ref[...].astype(o_ref.dtype)


def projection_forward(x, w1_t, gamma, beta, w2_t):
    """x: (B, n_in); w1_t: (n_in, n_hidden); gamma/beta: (1, n_hidden);
    w2_t: (n_hidden, n_out) -> (B, n_out)."""
    B, n_in = x.shape
    n_in_w, n_hidden = w1_t.shape
    n_hidden_w, n_out = w2_t.shape
    assert n_in_w == n_in and n_hidden_w == n_hidden
    out_dtype = x.dtype

    # Hardware-friendly padding: sublanes -> x16 (bf16 packing), lanes -> x128.
    Bp = _round_up(B, 16)
    nin_p = _round_up(n_in, 128)
    nh_p = _round_up(n_hidden, 128)
    no_p = _round_up(n_out, 128)

    xp = _pad2(x, Bp, nin_p, jnp.bfloat16)
    w1p = _pad2(w1_t, nin_p, nh_p, jnp.bfloat16)
    w2p = _pad2(w2_t, nh_p, no_p, jnp.bfloat16)
    gammap = _pad2(gamma, 1, nh_p, jnp.float32)
    betap = _pad2(beta, 1, nh_p, jnp.float32)

    # Feature-axis tiles: start big, shrink until the footprint fits the budget.
    tile_nh = _pick_tile(nh_p, 512)
    tile_no = _pick_tile(no_p, 512)
    while _vmem_bytes(Bp, nin_p, tile_nh, tile_no) > _VMEM_BUDGET and tile_nh > 128:
        tile_nh = _pick_tile(nh_p, tile_nh - 128)
    while _vmem_bytes(Bp, nin_p, tile_nh, tile_no) > _VMEM_BUDGET and tile_no > 128:
        tile_no = _pick_tile(no_p, tile_no - 128)

    grid = (no_p // tile_no, nh_p // tile_nh)  # (parallel output tiles, hidden reduction)

    grid_spec = pltpu.PrefetchScalarGridSpec(
        num_scalar_prefetch=0,
        grid=grid,
        in_specs=[
            pl.BlockSpec((Bp, nin_p), lambda j, k: (0, 0)),
            pl.BlockSpec((nin_p, tile_nh), lambda j, k: (0, k)),
            pl.BlockSpec((1, tile_nh), lambda j, k: (0, k)),
            pl.BlockSpec((1, tile_nh), lambda j, k: (0, k)),
            pl.BlockSpec((tile_nh, tile_no), lambda j, k: (k, j)),
        ],
        out_specs=pl.BlockSpec((Bp, tile_no), lambda j, k: (0, j)),
        scratch_shapes=[pltpu.VMEM((Bp, tile_no), jnp.float32)],
    )

    n_out_tiles = no_p // tile_no
    cost = pl.CostEstimate(
        flops=2 * Bp * nin_p * nh_p * n_out_tiles + 2 * Bp * nh_p * no_p,
        transcendentals=nh_p * n_out_tiles,
        bytes_accessed=(xp.size * 2 + w1p.size * 2 * n_out_tiles + w2p.size * 2
                        + gammap.size * 4 + betap.size * 4 + Bp * no_p * 4),
    )

    out_padded = pl.pallas_call(
        functools.partial(_projection_kernel, inv_b=float(1.0 / B)),
        out_shape=jax.ShapeDtypeStruct((Bp, no_p), jnp.float32),
        grid_spec=grid_spec,
        compiler_params=pltpu.CompilerParams(
            dimension_semantics=("parallel", "arbitrary"),
            vmem_limit_bytes=32 * 1024 * 1024,
        ),
        cost_estimate=cost,
    )(xp, w1p, gammap, betap, w2p)

    return out_padded[:B, :n_out].astype(out_dtype)


def _reference_matched(x, w1_t, gamma, beta, w2_t):
    """Mirrors kernel numerics (bf16 matmul operands, f32 accumulation/BN)."""
    h = jnp.dot(x.astype(jnp.bfloat16), w1_t.astype(jnp.bfloat16),
                preferred_element_type=jnp.float32)
    mean = jnp.mean(h, axis=0, keepdims=True)
    var = jnp.maximum(jnp.mean(h * h, axis=0, keepdims=True) - mean * mean, 0.0)
    scale = gamma * jax.lax.rsqrt(var + BN_EPS)
    shift = beta - mean * scale
    h = jnp.maximum(h * scale + shift, 0.0)
    return jnp.dot(h.astype(jnp.bfloat16), w2_t.astype(jnp.bfloat16),
                   preferred_element_type=jnp.float32)


def _reference_f32(x, w1_t, gamma, beta, w2_t):
    h = x @ w1_t
    mean = jnp.mean(h, axis=0, keepdims=True)
    var = jnp.mean((h - mean) ** 2, axis=0, keepdims=True)
    h = (h - mean) * jax.lax.rsqrt(var + BN_EPS)
    h = h * gamma + beta
    h = jnp.maximum(h, 0.0)
    return h @ w2_t


if __name__ == "__main__":
    # Small shapes consistent with the module.
    B, n_in, n_hidden, n_out = 8, 32, 64, 16

    key = jax.random.PRNGKey(0)
    kx, kw1, kw2, kg, kb = jax.random.split(key, 5)

    x = jax.random.normal(kx, (B, n_in), dtype=jnp.float32)

    # nn.Linear weights: lin1.weight (n_hidden, n_in), lin2.weight (n_out, n_hidden);
    # passed transposed so the kernel does row-major matmuls.
    w1 = jax.random.normal(kw1, (n_hidden, n_in), dtype=jnp.float32) * (1.0 / jnp.sqrt(n_in))
    w2 = jax.random.normal(kw2, (n_out, n_hidden), dtype=jnp.float32) * (1.0 / jnp.sqrt(n_hidden))
    gamma = 1.0 + 0.1 * jax.random.normal(kg, (1, n_hidden), dtype=jnp.float32)
    beta = 0.1 * jax.random.normal(kb, (1, n_hidden), dtype=jnp.float32)

    w1_t = w1.T  # (n_in, n_hidden)
    w2_t = w2.T  # (n_hidden, n_out)

    out = projection_forward(x, w1_t, gamma, beta, w2_t)
    out = jax.block_until_ready(out)
    assert out.shape == (B, n_out)

    # Strict check against a reference mirroring the kernel's numerics.
    ref_matched = _reference_matched(x, w1_t, gamma, beta, w2_t)
    assert jnp.allclose(out, ref_matched, atol=1e-4, rtol=1e-4), "mismatch vs matched reference"

    # Loose sanity check against the pure-f32 PyTorch-semantics reference.
    ref_f32 = _reference_f32(x, w1_t, gamma, beta, w2_t)
    assert jnp.allclose(out, ref_f32, atol=1e-1, rtol=1e-1), "mismatch vs f32 reference"

    print("KERNEL_OK")
</pallas_src>

<mosaic_0001>
module attributes {stable_mosaic.version = 11 : i64} {
  func.func @_projection_kernel(%arg0: i32, %arg1: i32, %arg2: memref<16x128xbf16, #tpu.memory_space<vmem>>, %arg3: memref<128x128xbf16, #tpu.memory_space<vmem>>, %arg4: memref<1x128xf32, #tpu.memory_space<vmem>>, %arg5: memref<1x128xf32, #tpu.memory_space<vmem>>, %arg6: memref<128x128xbf16, #tpu.memory_space<vmem>>, %arg7: memref<16x128xf32, #tpu.memory_space<vmem>>, %arg8: memref<16x128xf32, #tpu.memory_space<vmem>>) attributes {dimension_semantics = [#tpu.dimension_semantics<parallel>, #tpu.dimension_semantics<arbitrary>], iteration_bounds = array<i64: 1, 1>, scalar_prefetch = 0 : i64, scratch_operands = 1 : i64, tpu.core_type = #tpu.core_type<tc>, window_params = [{pipeline_mode = #tpu.pipeline_mode<synchronous>, transform_indices = @transform_0, window_bounds = array<i64: 16, 128>}, {transform_indices = @transform_1, window_bounds = array<i64: 128, 128>}, {transform_indices = @transform_2, window_bounds = array<i64: 1, 128>}, {transform_indices = @transform_3, window_bounds = array<i64: 1, 128>}, {transform_indices = @transform_4, window_bounds = array<i64: 128, 128>}, {transform_indices = @transform_5, window_bounds = array<i64: 16, 128>}]} {
    %c0_i32 = arith.constant 0 : i32
    %0 = arith.cmpi eq, %arg1, %c0_i32 : i32
    %1 = arith.extui %0 : i1 to i32
    %c0_i32_0 = arith.constant 0 : i32
    %2 = arith.cmpi ne, %1, %c0_i32_0 : i32
    scf.if %2 {
      %cst_24 = arith.constant 0.000000e+00 : f32
      %42 = vector.broadcast %cst_24 : f32 to vector<16x128xf32>
      %c0_25 = arith.constant 0 : index
      %c0_26 = arith.constant 0 : index
      %43 = vector.load %arg8[%c0_25, %c0_26] : memref<16x128xf32, #tpu.memory_space<vmem>>, vector<16x128xf32>
      tpu.vector_store %arg8[%c0_25, %c0_26], %42 {strides = array<i32>} : memref<16x128xf32, #tpu.memory_space<vmem>>, vector<16x128xf32>,
    } else {
    }
    %c0 = arith.constant 0 : index
    %c0_1 = arith.constant 0 : index
    %3 = vector.load %arg2[%c0, %c0_1] : memref<16x128xbf16, #tpu.memory_space<vmem>>, vector<16x128xbf16>
    %c0_2 = arith.constant 0 : index
    %c0_3 = arith.constant 0 : index
    %4 = vector.load %arg3[%c0_2, %c0_3] : memref<128x128xbf16, #tpu.memory_space<vmem>>, vector<128x128xbf16>
    %cst = arith.constant dense<0.000000e+00> : vector<16x128xf32>
    %5 = tpu.matmul %3, %4, %cst {dimension_numbers = #tpu.dot_dimension_numbers<[1], [0], [0], [1], [0, 0, 1, 1], [], []>} : vector<16x128xbf16>, vector<128x128xbf16>, vector<16x128xf32> -> vector<16x128xf32>
    %cst_4 = arith.constant dense<0.000000e+00> : vector<128xf32>
    %6 = vector.multi_reduction <add>, %5, %cst_4 [0] : vector<16x128xf32> to vector<128xf32>
    %7 = vector.shape_cast %6 : vector<128xf32> to vector<1x128xf32>
    %8 = arith.mulf %5, %5 : vector<16x128xf32>
    %cst_5 = arith.constant dense<0.000000e+00> : vector<128xf32>
    %9 = vector.multi_reduction <add>, %8, %cst_5 [0] : vector<16x128xf32> to vector<128xf32>
    %10 = vector.shape_cast %9 : vector<128xf32> to vector<1x128xf32>
    %cst_6 = arith.constant 1.250000e-01 : f32
    %11 = vector.broadcast %cst_6 : f32 to vector<1x128xf32>
    %12 = arith.mulf %7, %11 : vector<1x128xf32>
    %cst_7 = arith.constant 1.250000e-01 : f32
    %13 = vector.broadcast %cst_7 : f32 to vector<1x128xf32>
    %14 = arith.mulf %10, %13 : vector<1x128xf32>
    %15 = arith.mulf %12, %12 : vector<1x128xf32>
    %16 = arith.subf %14, %15 : vector<1x128xf32>
    %cst_8 = arith.constant 0.000000e+00 : f32
    %17 = vector.broadcast %cst_8 : f32 to vector<1x128xf32>
    %18 = arith.maximumf %16, %17 : vector<1x128xf32>
    %c0_9 = arith.constant 0 : index
    %c0_10 = arith.constant 0 : index
    %19 = vector.load %arg4[%c0_9, %c0_10] : memref<1x128xf32, #tpu.memory_space<vmem>>, vector<1x128xf32>
    %cst_11 = arith.constant 9.99999974E-6 : f32
    %20 = vector.broadcast %cst_11 : f32 to vector<1x128xf32>
    %21 = arith.addf %18, %20 : vector<1x128xf32>
    %22 = math.rsqrt %21 : vector<1x128xf32>
    %23 = arith.mulf %19, %22 : vector<1x128xf32>
    %c0_12 = arith.constant 0 : index
    %c0_13 = arith.constant 0 : index
    %24 = vector.load %arg5[%c0_12, %c0_13] : memref<1x128xf32, #tpu.memory_space<vmem>>, vector<1x128xf32>
    %25 = arith.mulf %12, %23 : vector<1x128xf32>
    %26 = arith.subf %24, %25 : vector<1x128xf32>
    %27 = vector.broadcast %23 : vector<1x128xf32> to vector<16x128xf32>
    %28 = arith.mulf %5, %27 : vector<16x128xf32>
    %29 = vector.broadcast %26 : vector<1x128xf32> to vector<16x128xf32>
    %30 = arith.addf %28, %29 : vector<16x128xf32>
    %cst_14 = arith.constant 0.000000e+00 : f32
    %31 = vector.broadcast %cst_14 : f32 to vector<16x128xf32>
    %32 = arith.maximumf %30, %31 : vector<16x128xf32>
    %c0_15 = arith.constant 0 : index
    %c0_16 = arith.constant 0 : index
    %33 = vector.load %arg8[%c0_15, %c0_16] : memref<16x128xf32, #tpu.memory_space<vmem>>, vector<16x128xf32>
    %34 = arith.truncf %32 : vector<16x128xf32> to vector<16x128xbf16>
    %c0_17 = arith.constant 0 : index
    %c0_18 = arith.constant 0 : index
    %35 = vector.load %arg6[%c0_17, %c0_18] : memref<128x128xbf16, #tpu.memory_space<vmem>>, vector<128x128xbf16>
    %cst_19 = arith.constant dense<0.000000e+00> : vector<16x128xf32>
    %36 = tpu.matmul %34, %35, %cst_19 {dimension_numbers = #tpu.dot_dimension_numbers<[1], [0], [0], [1], [0, 0, 1, 1], [], []>} : vector<16x128xbf16>, vector<128x128xbf16>, vector<16x128xf32> -> vector<16x128xf32>
    %37 = arith.addf %33, %36 : vector<16x128xf32>
    %c0_20 = arith.constant 0 : index
    %c0_21 = arith.constant 0 : index
    %38 = vector.load %arg8[%c0_20, %c0_21] : memref<16x128xf32, #tpu.memory_space<vmem>>, vector<16x128xf32>
    tpu.vector_store %arg8[%c0_20, %c0_21], %37 {strides = array<i32>} : memref<16x128xf32, #tpu.memory_space<vmem>>, vector<16x128xf32>,
    %c0_i32_22 = arith.constant 0 : i32
    %39 = arith.cmpi eq, %arg1, %c0_i32_22 : i32
    %40 = arith.extui %39 : i1 to i32
    %c0_i32_23 = arith.constant 0 : i32
    %41 = arith.cmpi ne, %40, %c0_i32_23 : i32
    scf.if %41 {
      %c0_24 = arith.constant 0 : index
      %c0_25 = arith.constant 0 : index
      %42 = vector.load %arg8[%c0_24, %c0_25] : memref<16x128xf32, #tpu.memory_space<vmem>>, vector<16x128xf32>
      %c0_26 = arith.constant 0 : index
      %c0_27 = arith.constant 0 : index
      %43 = vector.load %arg7[%c0_26, %c0_27] : memref<16x128xf32, #tpu.memory_space<vmem>>, vector<16x128xf32>
      tpu.vector_store %arg7[%c0_26, %c0_27], %42 {strides = array<i32>} : memref<16x128xf32, #tpu.memory_space<vmem>>, vector<16x128xf32>,
    } else {
    }
    return
  }
  func.func @transform_0(%arg0: i32, %arg1: i32) -> (i32, i32) {
    %c0_i32 = arith.constant 0 : i32
    %c0_i32_0 = arith.constant 0 : i32
    %c0_i32_1 = arith.constant 0 : i32
    return %c0_i32, %c0_i32_0 : i32, i32
  }
  func.func @transform_1(%arg0: i32, %arg1: i32) -> (i32, i32) {
    %c0_i32 = arith.constant 0 : i32
    %c0_i32_0 = arith.constant 0 : i32
    return %c0_i32, %arg1 : i32, i32
  }
  func.func @transform_2(%arg0: i32, %arg1: i32) -> (i32, i32) {
    %c0_i32 = arith.constant 0 : i32
    %c0_i32_0 = arith.constant 0 : i32
    return %c0_i32, %arg1 : i32, i32
  }
  func.func @transform_3(%arg0: i32, %arg1: i32) -> (i32, i32) {
    %c0_i32 = arith.constant 0 : i32
    %c0_i32_0 = arith.constant 0 : i32
    return %c0_i32, %arg1 : i32, i32
  }
  func.func @transform_4(%arg0: i32, %arg1: i32) -> (i32, i32) {
    %c0_i32 = arith.constant 0 : i32
    return %arg1, %arg0 : i32, i32
  }
  func.func @transform_5(%arg0: i32, %arg1: i32) -> (i32, i32) {
    %c0_i32 = arith.constant 0 : i32
    %c0_i32_0 = arith.constant 0 : i32
    return %c0_i32, %arg0 : i32, i32
  }
}

</mosaic_0001>

<bundles_post_ra>
// kernel: tpu_custom_call.1
= control target key start
LH: loop header
LB: loop body
LE: loop exit
PB: predicated region body
PF: predicated region fallthrough
CT: control target
= control target key end

     0   :  { %10 = vsyncpa [#allocation4], 0  ;;  %s673_s0 = inlined_call_operand.hbm [shape: bf16[16,128], index: 0, kind: input, shape index: {}]   ;;  %s674_s1 = inlined_call_operand.hbm [shape: bf16[128,128], index: 1, kind: input, shape index: {}]   ;;  %s675_s2 = inlined_call_operand.vmem [shape: f32[1,128], index: 2, kind: input, shape index: {}]   ;;  %s676_s3 = inlined_call_operand.vmem [shape: f32[1,128], index: 3, kind: input, shape index: {}]   ;;  %s677_s4 = inlined_call_operand.hbm [shape: bf16[128,128], index: 4, kind: input, shape index: {}]   ;;  %s678_s5 = inlined_call_operand.hbm [shape: f32[16,128], index: 5, kind: output, shape index: {}]  }
   0x1   :  { %11 = vsyncpa [#allocation7], 0 }
   0x2   :  { %12 = vsyncpa [#allocation5], 0  ;;  %s563_s18 = smov [#allocation6]   ;;  %s564_s20 = smov [#allocation3]  }
   0x3   :  { %s30_s19 = sshll.u32 %s563_s18, 4  ;;  %s18_s21 = sshll.u32 %s564_s20, 4  ;;  %s31_s19 = int_to_ptr.vmem [resolvable:$true] %s30_s19  ;;  %s603_s21 = int_to_ptr.vmem [resolvable:$true] %s18_s21 }
   0x4   :  { %s469_s24 = scalar_lea.hbm %s674_s1, 1024 }
   0x5   :  { %p470_p0 = scmp.ne.s32.totalorder %s674_s1, %s469_s24  ;;  %p473_p1 = scmp.lt.u32.totalorder %s469_s24, %s674_s1 }
   0x7   :  { %p475_p2 = pnand %p473_p1, %p470_p0 }
   0x9   :  { %478 = shalt.err (!%p475_p2)
}
   0xa   :  { %s479_s29 = scalar_lea.vmem %s31_s19, 1024  ;;  %p484_p4 = scmp.lt.s32.totalorder %s31_s19, %s31_s19 }
   0xb   :  { %p480_p3 = scmp.ne.s32.totalorder %s31_s19, %s479_s29  ;;  %p485_p5 = scmp.lt.s32.totalorder %s479_s29, %s479_s29 }
   0xd   :  { %p486_p6 = por %p485_p5, %p484_p4 }
   0xf   :  { %p487_p7 = pnand %p486_p6, %p480_p3 }
  0x11   :  { %490 = shalt.err (!%p487_p7)
}
  0x12   :  { %s565_s30 = smov 64   ;;  %s566_s6 = smov 4  }
  0x13   :  { %36 = dma.hbm_to_vmem [thread:$0]  %s674_s1, 1024, %s31_s19, [#allocation7], %s565_s30, %s565_s30, %s566_s6  }
  0x14   :  { %s491_s11 = scalar_lea.hbm %s673_s0, 128 }
  0x15   :  { %p492_p8 = scmp.ne.s32.totalorder %s673_s0, %s491_s11  ;;  %p495_p9 = scmp.lt.u32.totalorder %s491_s11, %s673_s0 }
  0x17   :  { %p497_p10 = pnand %p495_p9, %p492_p8 }
  0x19   :  { %500 = shalt.err (!%p497_p10)
}
  0x1a   :  { %s501_s16 = scalar_lea.vmem %s603_s21, 128  ;;  %p506_p12 = scmp.lt.s32.totalorder %s603_s21, %s603_s21 }
  0x1b   :  { %p502_p11 = scmp.ne.s32.totalorder %s603_s21, %s501_s16  ;;  %p507_p13 = scmp.lt.s32.totalorder %s501_s16, %s501_s16 }
  0x1d   :  { %p508_p0 = por %p507_p13, %p506_p12 }
  0x1f   :  { %p509_p1 = pnand %p508_p0, %p502_p11 }
  0x21   :  { %512 = shalt.err (!%p509_p1)
}
  0x22   :  { %24 = dma.hbm_to_vmem [thread:$0]  %s673_s0, 128, %s603_s21, [#allocation4], %s565_s30, %s565_s30, %s566_s6  }
  0x23   :  { %s567_s18 = smov [#allocation8]   ;;  %s513_s23 = scalar_lea.hbm %s677_s4, 1024 }
  0x24   :  { %s46_s19 = sshll.u32 %s567_s18, 4  ;;  %p514_p2 = scmp.ne.s32.totalorder %s677_s4, %s513_s23  ;;  %s47_s19 = int_to_ptr.vmem [resolvable:$true] %s46_s19 }
  0x25   :  { %p517_p3 = scmp.lt.u32.totalorder %s513_s23, %s677_s4 }
  0x27   :  { %p519_p4 = pnand %p517_p3, %p514_p2 }
  0x29   :  { %522 = shalt.err (!%p519_p4)
}
  0x2a   :  { %s523_s28 = scalar_lea.vmem %s47_s19, 1024  ;;  %p528_p6 = scmp.lt.s32.totalorder %s47_s19, %s47_s19 }
  0x2b   :  { %p524_p5 = scmp.ne.s32.totalorder %s47_s19, %s523_s28  ;;  %p529_p7 = scmp.lt.s32.totalorder %s523_s28, %s523_s28 }
  0x2d   :  { %p530_p8 = por %p529_p7, %p528_p6 }
  0x2f   :  { %p531_p9 = pnand %p530_p8, %p524_p5 }
  0x31   :  { %534 = shalt.err (!%p531_p9)
}
  0x32   :  { %52 = dma.hbm_to_vmem [thread:$0]  %s677_s4, 1024, %s47_s19, [#allocation7], %s565_s30, %s565_s30, %s566_s6  }
  0x33   :  { %557 = dma.done.wait [#allocation4], 128  }
  0x34   :  { %558 = vsyncadd [#allocation4], 4294967168 }
  0x35   :  { %559 = dma.done.wait [#allocation7], 2048  }
  0x36   :  { %560 = vsyncadd [#allocation7], 4294965248  ;;  %v568_v0 = vmov 0.0   ;;  %vm569_vm0 = vmmov 0   ;;  %v450_v1 = vld [vmem:[#allocation6] sm:$0xff]   ;;  %v451_v2 = vld [vmem:[#allocation6 + $0x8] sm:$0xff]   ;;  %v211_v44 = vlaneseq }
  0x37   :  { %400 = vmatprep.subr.bf16.mxu0 %v568_v0  ;;  %416 = vmatprep.mubr.msk.bf16.mxu0 %vm569_vm0, %v568_v0  ;;  %v452_v3 = vld [vmem:[#allocation6 + $0x10] sm:$0xff]   ;;  %v453_v4 = vld [vmem:[#allocation6 + $0x18] sm:$0xff]   ;;  %v454_v5 = vld [vmem:[#allocation6 + $0x20] sm:$0xff]  }
  0x38   :  { %420 = vmatprep.subr.bf16.mxu1 %v568_v0  ;;  %436 = vmatprep.mubr.msk.bf16.mxu1 %vm569_vm0, %v568_v0  ;;  %v455_v6 = vld [vmem:[#allocation6 + $0x28] sm:$0xff]   ;;  %v456_v7 = vld [vmem:[#allocation6 + $0x30] sm:$0xff]   ;;  %v457_v8 = vld [vmem:[#allocation6 + $0x38] sm:$0xff]   ;;  %v212_v45 = vshrl.u32 %v211_v44, 7 }
  0x39   :  { %401 = vmatpush3.bf16.msra.mxu0 %v450_v1  ;;  %v458_v9 = vld [vmem:[#allocation3] sm:$0xff]   ;;  %v459_v10 = vld [vmem:[#allocation8] sm:$0xff]   ;;  %v460_v11 = vld [vmem:[#allocation8 + $0x8] sm:$0xff]  }
  0x3a   :  { %402 = vmatprep.subr.bf16.mxu0 %v568_v0  ;;  %421 = vmatpush3.bf16.msra.mxu1 %v459_v10  ;;  %v461_v12 = vld [vmem:[#allocation8 + $0x10] sm:$0xff]   ;;  %v462_v13 = vld [vmem:[#allocation8 + $0x18] sm:$0xff]   ;;  %v463_v14 = vld [vmem:[#allocation8 + $0x20] sm:$0xff]   ;;  %v213_v47 = vsub.s32 0, %v212_v45 }
  0x3b   :  { %422 = vmatprep.subr.bf16.mxu1 %v568_v0  ;;  %v464_v15 = vld [vmem:[#allocation8 + $0x28] sm:$0xff]   ;;  %v465_v16 = vld [vmem:[#allocation8 + $0x30] sm:$0xff]   ;;  %v466_v17 = vld [vmem:[#allocation8 + $0x38] sm:$0xff]  }
  0x3c   :  { %v203_v46 = vld [vmem:[%s675_s2] sm:$0x1]  ;;  %s570_s2 = smov [#allocation9]  }
  0x3d   :  { %403 = vmatpush3.bf16.msra.mxu0 %v451_v2  ;;  %v207_v50 = vld [vmem:[%s676_s3] sm:$0x1]  ;;  %s352_s7 = sshll.u32 %s570_s2, 4  ;;  %s353_s7 = int_to_ptr.vmem [resolvable:$true] %s352_s7 }
  0x3e   :  { %404 = vmatprep.subr.bf16.mxu0 %v568_v0  ;;  %423 = vmatpush3.bf16.msra.mxu1 %v460_v11  ;;  %s535_s3 = scalar_lea.vmem %s353_s7, 256  ;;  %p540_p11 = scmp.lt.s32.totalorder %s353_s7, %s353_s7 }
  0x3f   :  { %424 = vmatprep.subr.bf16.mxu1 %v568_v0  ;;  %p536_p10 = scmp.ne.s32.totalorder %s353_s7, %s535_s3  ;;  %p541_p12 = scmp.lt.s32.totalorder %s535_s3, %s535_s3 }
  0x41   :  { %405 = vmatpush3.bf16.msra.mxu0 %v452_v3  ;;  %p542_p13 = por %p541_p12, %p540_p11 }
  0x42   :  { %406 = vmatprep.subr.bf16.mxu0 %v568_v0  ;;  %425 = vmatpush3.bf16.msra.mxu1 %v461_v12 }
  0x43   :  { %426 = vmatprep.subr.bf16.mxu1 %v568_v0  ;;  %p543_p0 = pnand %p542_p13, %p536_p10 }
  0x45   :  { %407 = vmatpush3.bf16.msra.mxu0 %v453_v4 }
  0x46   :  { %408 = vmatprep.subr.bf16.mxu0 %v568_v0  ;;  %427 = vmatpush3.bf16.msra.mxu1 %v462_v13 }
  0x47   :  { %428 = vmatprep.subr.bf16.mxu1 %v568_v0 }
  0x49   :  { %409 = vmatpush3.bf16.msra.mxu0 %v454_v5 }
  0x4a   :  { %410 = vmatprep.subr.bf16.mxu0 %v568_v0  ;;  %429 = vmatpush3.bf16.msra.mxu1 %v463_v14 }
  0x4b   :  { %430 = vmatprep.subr.bf16.mxu1 %v568_v0 }
  0x4d   :  { %411 = vmatpush3.bf16.msra.mxu0 %v455_v6 }
  0x4e   :  { %412 = vmatprep.subr.bf16.mxu0 %v568_v0  ;;  %431 = vmatpush3.bf16.msra.mxu1 %v464_v15 }
  0x4f   :  { %432 = vmatprep.subr.bf16.mxu1 %v568_v0 }
  0x51   :  { %413 = vmatpush3.bf16.msra.mxu0 %v456_v7 }
  0x52   :  { %414 = vmatprep.subr.bf16.mxu0 %v568_v0  ;;  %433 = vmatpush3.bf16.msra.mxu1 %v465_v16 }
  0x53   :  { %434 = vmatprep.subr.bf16.mxu1 %v568_v0 }
  0x55   :  { %415 = vmatpush3.bf16.msra.mxu0 %v457_v8 }
  0x56   :  { %435 = vmatpush3.bf16.msra.mxu1 %v466_v17 }
  0x58   :  { %417 = vmatmul.mubr.bf16.vlgmr.msra.gmra.mrb[0].mxu0 %v458_v9 }
 0x12b   :  { %v175_v18 = vpop.f32.mrb[0].mxu0 }
 0x12c   :  { %v418_v19 = vpop.f32.mrb[1].mxu0  ;;  %v189_v21 = vmul.f32 %v175_v18, %v175_v18 }
 0x12d   :  { %v178_v20 = vpop.f32.mrb[2].mxu0 }
 0x12e   :  { %v182_v22 = vadd.f32 %v178_v20, %v175_v18  ;;  %v190_v23 = vmul.f32 %v178_v20, %v178_v20  ;;  %v419_v24 = vpop.f32.mrb[3].mxu0 }
 0x130   :  { %v183_v25 = vrot.slane %v182_v22, 4  ;;  %v191_v26 = vadd.f32 %v190_v23, %v189_v21 }
 0x132   :  { %v184_v27 = vadd.f32 %v183_v25, %v182_v22  ;;  %v192_v28 = vrot.slane %v191_v26, 4 }
 0x134   :  { %v185_v29 = vrot.slane %v184_v27, 2  ;;  %v193_v30 = vadd.f32 %v192_v28, %v191_v26 }
 0x136   :  { %v186_v31 = vadd.f32 %v185_v29, %v184_v27  ;;  %v194_v32 = vrot.slane %v193_v30, 2 }
 0x138   :  { %v187_v33 = vrot.slane %v186_v31, 1  ;;  %v195_v34 = vadd.f32 %v194_v32, %v193_v30 }
 0x13a   :  { %v188_v35 = vadd.f32 %v187_v33, %v186_v31  ;;  %v196_v36 = vrot.slane %v195_v34, 1 }
 0x13c   :  { %v197_v37 = vadd.f32 %v196_v36, %v195_v34  ;;  %v198_v38 = vmul.f32 0.125, %v188_v35 }
 0x13e   :  { %v199_v39 = vmul.f32 0.125, %v197_v37  ;;  %v200_v40 = vmul.f32 %v198_v38, %v198_v38 }
 0x140   :  { %v201_v41 = vsub.f32 %v199_v39, %v200_v40 }
 0x142   :  { %v202_v42 = vmax.f32 %v201_v41, 0.0 }
 0x144   :  { %v204_v43 = vadd.f32 1e-05, %v202_v42 }
 0x146   :  { %467 = vrsqrt.f32 %v204_v43 }
 0x150   :  { %v468_v48 = vpop.eup %467 }
 0x151   :  { %v206_v49 = vmul.f32 %v468_v48, %v203_v46 }
 0x153   :  { %v208_v51 = vmul.f32 %v206_v49, %v198_v38  ;;  %v214_v52 = vrot.slane %v206_v49, %v213_v47 }
 0x155   :  { %v209_v53 = vsub.f32 %v207_v50, %v208_v51  ;;  %v216_v54 = vmul.f32 %v214_v52, %v175_v18  ;;  %v217_v55 = vmul.f32 %v214_v52, %v178_v20 }
 0x157   :  { %v222_v56 = vrot.slane %v209_v53, %v213_v47 }
 0x159   :  { %v225_v57 = vadd.f32 %v222_v56, %v217_v55  ;;  %v224_v58 = vadd.f32 %v222_v56, %v216_v54 }
 0x15b   :  { %v226_v59 = vmax.f32 %v224_v58, 0.0  ;;  %v227_v60 = vmax.f32 %v225_v57, 0.0 }
 0x15d   :  { %v230_v61 = vpack.c.bf16 %v227_v60, %v226_v59 }
 0x15f   :  { %437 = vmatmul.mubr.bf16.vlgmr.msra.gmra.mrb[0].mxu1 %v230_v61 }
 0x232   :  { %v329_v62 = vpop.f32.mrb[0].mxu1 }
 0x233   :  { %345 = vst [vmem:[#allocation9] sm:$0xff] %v329_v62  ;;  %v438_v63 = vpop.f32.mrb[1].mxu1 }
 0x234   :  { %v332_v0 = vpop.f32.mrb[2].mxu1 }
 0x235   :  { %346 = vst [vmem:[#allocation9 + $0x8] sm:$0xff] %v332_v0  ;;  %v439_v1 = vpop.f32.mrb[3].mxu1 }
 0x236   :  { %546 = shalt.err (!%p543_p0)
}
 0x237   :  { %s547_s10 = scalar_lea.hbm %s678_s5, 256 }
 0x238   :  { %p548_p1 = scmp.ne.s32.totalorder %s678_s5, %s547_s10  ;;  %p551_p2 = scmp.lt.u32.totalorder %s547_s10, %s678_s5 }
 0x23a   :  { %p553_p3 = pnand %p551_p2, %p548_p1 }
 0x23c   :  { %556 = shalt.err (!%p553_p3)
}
 0x23d   :  { %s571_s15 = smov 128   ;;  %s572_s16 = smov 8  }
 0x23e   :  { %358 = dma.vmem_to_hbm [thread:$0]  %s353_s7, 256, %s678_s5, [#allocation5], %s571_s15, %s571_s15, %s572_s16  }
 0x23f   :  { %561 = dma.done.wait [#allocation5], 256  }
 0x240   :  { %562 = vsyncadd [#allocation5], 4294967040 }
 0x241   :  { %362 = vsyncpa [#allocation4], 1 }
 0x242   :  { %363 = vsyncpa [#allocation7], 1 }
 0x243   :  { %364 = vsyncpa [#allocation5], 1 }

</bundles_post_ra>
